<compile_context>
chip_gen: v5e
topology: v5e:2x2
jax: 0.10.0
libtpu: 0.0.40
codegen_flags: <defaults>
</compile_context>

<pallas_src>
import functools

import jax
import jax.numpy as jnp
from jax.experimental import pallas as pl
from jax.experimental.pallas import tpu as pltpu

TRANS_DIM = 3
LABEL_DIM = 7


def _round_up(x: int, m: int) -> int:
    return -(-x // m) * m


def _transform_loss_kernel(yp_ref, yt_ref, out_ref, acc_t, acc_r, *,
                           p, sx, sq, inv_n, eps, batch, block_b):
    pid = pl.program_id(0)

    @pl.when(pid == 0)
    def _():
        acc_t[...] = jnp.zeros_like(acc_t)
        acc_r[...] = jnp.zeros_like(acc_r)

    # Whole-block loads; cast to f32 (no-op for f32 inputs, cheap for bf16).
    yp = yp_ref[...].astype(jnp.float32)      # (7, block_b)
    yt = yt_ref[...].astype(jnp.float32)      # (7, block_b)

    # Quaternion squared norm from rows 3..6 (one whole-block square + 3 row adds).
    yp2 = yp * yp
    q_sq = (yp2[3:4, :] + yp2[4:5, :]) + (yp2[5:6, :] + yp2[6:7, :])     # (1, block_b)
    inv_norm = jax.lax.rsqrt(jnp.maximum(q_sq, eps * eps))               # EUP

    # Per-sublane scale: 1 for translation rows (0..2), inv_norm for quat rows (3..6).
    row_id = jax.lax.broadcasted_iota(jnp.int32, yp.shape, 0)            # (7, block_b)
    scale = jnp.where(row_id < TRANS_DIM, 1.0, inv_norm)                 # (7, block_b)

    d = yp * scale - yt                                                  # whole-block

    if p == 2:
        d2 = d * d
        t_pow = (d2[0:1, :] + d2[1:2, :]) + d2[2:3, :]
        r_pow = (d2[3:4, :] + d2[4:5, :]) + (d2[5:6, :] + d2[6:7, :])
        t_loss = jnp.sqrt(t_pow)                                         # EUP
        r_loss = jnp.sqrt(r_pow)
    elif p == 1:
        # Plain abs-sum: no pow, no final root.
        da = jnp.abs(d)
        t_loss = (da[0:1, :] + da[1:2, :]) + da[2:3, :]
        r_loss = (da[3:4, :] + da[4:5, :]) + (da[5:6, :] + da[6:7, :])
    else:
        fp = float(p)
        dp = jnp.abs(d) ** fp
        t_pow = (dp[0:1, :] + dp[1:2, :]) + dp[2:3, :]
        r_pow = (dp[3:4, :] + dp[4:5, :]) + (dp[5:6, :] + dp[6:7, :])
        t_loss = t_pow ** (1.0 / fp)
        r_loss = r_pow ** (1.0 / fp)

    # Lane-tail mask: only needed when block_b does not divide the true batch.
    # Must be a select (jnp.where): out-of-range lanes hold undefined data and the
    # arithmetic above may have produced NaN/Inf there.
    if batch % block_b != 0:
        lane = jax.lax.broadcasted_iota(jnp.int32, t_loss.shape, 1)
        valid = (pid * block_b + lane) < batch
        t_loss = jnp.where(valid, t_loss, 0.0)
        r_loss = jnp.where(valid, r_loss, 0.0)

    # Per-lane running sums.
    acc_t[...] += t_loss
    acc_r[...] += r_loss

    @pl.when(pid == pl.num_programs(0) - 1)
    def _():
        # Single cross-lane reduction + weighting, once per kernel (not per tile).
        t_total = jnp.sum(acc_t[...], keepdims=True)       # (1, 1)
        r_total = jnp.sum(acc_r[...], keepdims=True)       # (1, 1)
        out_ref[...] = t_total * (sx * inv_n) + r_total * (sq * inv_n)


def transform_loss(y_pred, y, *, p=2, sx=1.0, sq=1.0, eps=1e-12, block_b=65536):
    """loss = mean(||t_pred - t||_p) * sx + mean(||normalize(q_pred) - q||_p) * sq."""
    b, d = y_pred.shape
    assert d == LABEL_DIM and y.shape == (b, d)
    # TODO(synk): PyTorch raises RuntimeError on nan/inf loss; check the returned
    # scalar on the host in the wrapper if that behavior is required.
    # TODO(synk): ideally upstream keeps pose tensors in (7, B) layout (or fuses this
    # loss into the kernel producing y_pred) so the standalone XLA transpose below
    # (a full extra HBM read+write) disappears.

    # Lane tile for the batch axis: multiple of 128, no larger than the padded batch.
    block_b = max(128, min(_round_up(int(block_b), 128), _round_up(b, 128)))
    grid = (pl.cdiv(b, block_b),)

    # Stream bf16 as bf16 (half the HBM bytes); everything else goes through f32.
    dt = jnp.asarray(y_pred).dtype
    if dt != jnp.bfloat16:
        dt = jnp.float32
    yp = jnp.asarray(y_pred, dt).T            # (7, B), no pad
    yt = jnp.asarray(y, dt).T                 # (7, B), no pad

    kernel = functools.partial(
        _transform_loss_kernel,
        p=int(p), sx=float(sx), sq=float(sq),
        inv_n=1.0 / float(b), eps=float(eps),
        batch=int(b), block_b=int(block_b),
    )

    out = pl.pallas_call(
        kernel,
        out_shape=jax.ShapeDtypeStruct((1, 1), jnp.float32),
        grid=grid,
        in_specs=[
            # 7 == full second-to-last array dim, block_b is a multiple of 128.
            pl.BlockSpec((LABEL_DIM, block_b), lambda i: (0, i)),
            pl.BlockSpec((LABEL_DIM, block_b), lambda i: (0, i)),
        ],
        out_specs=pl.BlockSpec((1, 1), lambda i: (0, 0)),
        scratch_shapes=[
            pltpu.VMEM((1, block_b), jnp.float32),   # running per-lane sum of t_loss
            pltpu.VMEM((1, block_b), jnp.float32),   # running per-lane sum of r_loss
        ],
        compiler_params=pltpu.CompilerParams(dimension_semantics=("arbitrary",)),
    )(yp, yt)
    return out[0, 0]


if __name__ == "__main__":
    key = jax.random.PRNGKey(0)
    k1, k2, k3, k4 = jax.random.split(key, 4)
    B = 300  # not a multiple of 128: exercises the masked partial last lane tile

    # Predicted pose: random translation + unnormalized quaternion head output.
    t_pred = jax.random.normal(k1, (B, 3), jnp.float32)
    q_pred = jax.random.normal(k2, (B, 4), jnp.float32)
    # Ground-truth pose: random translation + unit quaternion.
    t_true = jax.random.normal(k3, (B, 3), jnp.float32)
    q_true = jax.random.normal(k4, (B, 4), jnp.float32)
    q_true = q_true / jnp.linalg.norm(q_true, axis=1, keepdims=True)

    y_pred = jnp.concatenate([t_pred, q_pred], axis=1)   # (B, 7)
    y_true = jnp.concatenate([t_true, q_true], axis=1)   # (B, 7)

    sx, sq_w = 1.0, 10.0

    def ref_loss(p):
        qn = q_pred / jnp.maximum(
            jnp.linalg.norm(q_pred, axis=1, keepdims=True), 1e-12)
        t_ref = jnp.mean(jnp.sum(jnp.abs(t_pred - t_true) ** p, axis=1) ** (1.0 / p))
        r_ref = jnp.mean(jnp.sum(jnp.abs(qn - q_true) ** p, axis=1) ** (1.0 / p))
        return t_ref * sx + r_ref * sq_w

    # Big default tile (grid=1) and a small tile (grid=3 with accumulation and a
    # masked 44-lane tail) for both the p=2 hot path and the p=1 special case.
    for p in (2, 1):
        ref = ref_loss(p)
        for blk in (65536, 128):
            loss = transform_loss(y_pred, y_true, p=p, sx=sx, sq=sq_w, block_b=blk)
            jax.block_until_ready(loss)
            assert jnp.allclose(loss, ref, atol=1e-4, rtol=1e-4), (p, blk, loss, ref)

    # bf16 inputs stream as bf16 (half the HBM traffic); all math stays f32 in-kernel.
    loss_bf16 = transform_loss(y_pred.astype(jnp.bfloat16),
                               y_true.astype(jnp.bfloat16), p=2, sx=sx, sq=sq_w)
    jax.block_until_ready(loss_bf16)
    assert bool(jnp.isfinite(loss_bf16))

    print("KERNEL_OK")
</pallas_src>

<mosaic_0001>
module attributes {stable_mosaic.version = 11 : i64} {
  func.func @_transform_loss_kernel(%arg0: i32, %arg1: memref<7x384xf32, #tpu.memory_space<vmem>>, %arg2: memref<7x384xf32, #tpu.memory_space<vmem>>, %arg3: memref<1x1xf32, #tpu.memory_space<vmem>>, %arg4: memref<1x384xf32, #tpu.memory_space<vmem>>, %arg5: memref<1x384xf32, #tpu.memory_space<vmem>>) attributes {dimension_semantics = [#tpu.dimension_semantics<arbitrary>], iteration_bounds = array<i64: 1>, scalar_prefetch = 0 : i64, scratch_operands = 2 : i64, tpu.core_type = #tpu.core_type<tc>, window_params = [{transform_indices = @transform_0, window_bounds = array<i64: 7, 384>}, {transform_indices = @transform_1, window_bounds = array<i64: 7, 384>}, {pipeline_mode = #tpu.pipeline_mode<synchronous>, transform_indices = @transform_2, window_bounds = array<i64: 1, 1>}]} {
    %c0_i32 = arith.constant 0 : i32
    %0 = arith.cmpi eq, %arg0, %c0_i32 : i32
    %1 = arith.extui %0 : i1 to i32
    %c0_i32_0 = arith.constant 0 : i32
    %2 = arith.cmpi ne, %1, %c0_i32_0 : i32
    scf.if %2 {
      %cst_17 = arith.constant 0.000000e+00 : f32
      %59 = vector.broadcast %cst_17 : f32 to vector<1x384xf32>
      %c0_18 = arith.constant 0 : index
      %c0_19 = arith.constant 0 : index
      %60 = vector.load %arg4[%c0_18, %c0_19] : memref<1x384xf32, #tpu.memory_space<vmem>>, vector<1x384xf32>
      tpu.vector_store %arg4[%c0_18, %c0_19], %59 {strides = array<i32>} : memref<1x384xf32, #tpu.memory_space<vmem>>, vector<1x384xf32>,
      %cst_20 = arith.constant 0.000000e+00 : f32
      %61 = vector.broadcast %cst_20 : f32 to vector<1x384xf32>
      %c0_21 = arith.constant 0 : index
      %c0_22 = arith.constant 0 : index
      %62 = vector.load %arg5[%c0_21, %c0_22] : memref<1x384xf32, #tpu.memory_space<vmem>>, vector<1x384xf32>
      tpu.vector_store %arg5[%c0_21, %c0_22], %61 {strides = array<i32>} : memref<1x384xf32, #tpu.memory_space<vmem>>, vector<1x384xf32>,
    } else {
    }
    %c0 = arith.constant 0 : index
    %c0_1 = arith.constant 0 : index
    %3 = vector.load %arg1[%c0, %c0_1] : memref<7x384xf32, #tpu.memory_space<vmem>>, vector<7x384xf32>
    %c0_2 = arith.constant 0 : index
    %c0_3 = arith.constant 0 : index
    %4 = vector.load %arg2[%c0_2, %c0_3] : memref<7x384xf32, #tpu.memory_space<vmem>>, vector<7x384xf32>
    %5 = arith.mulf %3, %3 : vector<7x384xf32>
    %6 = vector.extract_strided_slice %5 {offsets = [3, 0], sizes = [1, 384], strides = [1, 1]} : vector<7x384xf32> to vector<1x384xf32>
    %7 = vector.extract_strided_slice %5 {offsets = [4, 0], sizes = [1, 384], strides = [1, 1]} : vector<7x384xf32> to vector<1x384xf32>
    %8 = arith.addf %6, %7 : vector<1x384xf32>
    %9 = vector.extract_strided_slice %5 {offsets = [5, 0], sizes = [1, 384], strides = [1, 1]} : vector<7x384xf32> to vector<1x384xf32>
    %10 = vector.extract_strided_slice %5 {offsets = [6, 0], sizes = [1, 384], strides = [1, 1]} : vector<7x384xf32> to vector<1x384xf32>
    %11 = arith.addf %9, %10 : vector<1x384xf32>
    %12 = arith.addf %8, %11 : vector<1x384xf32>
    %cst = arith.constant 1.000000e-24 : f32
    %13 = vector.broadcast %cst : f32 to vector<1x384xf32>
    %14 = arith.maximumf %12, %13 : vector<1x384xf32>
    %15 = math.rsqrt %14 : vector<1x384xf32>
    %16 = tpu.iota {dimensions = array<i32: 0>} : vector<7x384xi32>
    %c3_i32 = arith.constant 3 : i32
    %17 = vector.broadcast %c3_i32 : i32 to vector<7x384xi32>
    %18 = arith.cmpi slt, %16, %17 : vector<7x384xi32>
    %cst_4 = arith.constant 1.000000e+00 : f32
    %19 = vector.broadcast %cst_4 : f32 to vector<7x384xf32>
    %20 = vector.shape_cast %15 : vector<1x384xf32> to vector<1x384xf32>
    %21 = vector.broadcast %20 : vector<1x384xf32> to vector<7x384xf32>
    %22 = arith.select %18, %19, %21 : vector<7x384xi1>, vector<7x384xf32>
    %23 = arith.mulf %3, %22 : vector<7x384xf32>
    %24 = arith.subf %23, %4 : vector<7x384xf32>
    %25 = arith.mulf %24, %24 : vector<7x384xf32>
    %26 = vector.extract_strided_slice %25 {offsets = [0, 0], sizes = [1, 384], strides = [1, 1]} : vector<7x384xf32> to vector<1x384xf32>
    %27 = vector.extract_strided_slice %25 {offsets = [1, 0], sizes = [1, 384], strides = [1, 1]} : vector<7x384xf32> to vector<1x384xf32>
    %28 = arith.addf %26, %27 : vector<1x384xf32>
    %29 = vector.extract_strided_slice %25 {offsets = [2, 0], sizes = [1, 384], strides = [1, 1]} : vector<7x384xf32> to vector<1x384xf32>
    %30 = arith.addf %28, %29 : vector<1x384xf32>
    %31 = vector.extract_strided_slice %25 {offsets = [3, 0], sizes = [1, 384], strides = [1, 1]} : vector<7x384xf32> to vector<1x384xf32>
    %32 = vector.extract_strided_slice %25 {offsets = [4, 0], sizes = [1, 384], strides = [1, 1]} : vector<7x384xf32> to vector<1x384xf32>
    %33 = arith.addf %31, %32 : vector<1x384xf32>
    %34 = vector.extract_strided_slice %25 {offsets = [5, 0], sizes = [1, 384], strides = [1, 1]} : vector<7x384xf32> to vector<1x384xf32>
    %35 = vector.extract_strided_slice %25 {offsets = [6, 0], sizes = [1, 384], strides = [1, 1]} : vector<7x384xf32> to vector<1x384xf32>
    %36 = arith.addf %34, %35 : vector<1x384xf32>
    %37 = arith.addf %33, %36 : vector<1x384xf32>
    %38 = math.sqrt %30 : vector<1x384xf32>
    %39 = math.sqrt %37 : vector<1x384xf32>
    %40 = tpu.iota {dimensions = array<i32: 1>} : vector<1x384xi32>
    %c384_i32 = arith.constant 384 : i32
    %41 = arith.muli %arg0, %c384_i32 : i32
    %42 = vector.broadcast %41 : i32 to vector<1x384xi32>
    %43 = arith.addi %42, %40 : vector<1x384xi32>
    %c300_i32 = arith.constant 300 : i32
    %44 = vector.broadcast %c300_i32 : i32 to vector<1x384xi32>
    %45 = arith.cmpi slt, %43, %44 : vector<1x384xi32>
    %cst_5 = arith.constant 0.000000e+00 : f32
    %46 = vector.broadcast %cst_5 : f32 to vector<1x384xf32>
    %47 = arith.select %45, %38, %46 : vector<1x384xi1>, vector<1x384xf32>
    %cst_6 = arith.constant 0.000000e+00 : f32
    %48 = vector.broadcast %cst_6 : f32 to vector<1x384xf32>
    %49 = arith.select %45, %39, %48 : vector<1x384xi1>, vector<1x384xf32>
    %c0_7 = arith.constant 0 : index
    %c0_8 = arith.constant 0 : index
    %50 = vector.load %arg4[%c0_7, %c0_8] : memref<1x384xf32, #tpu.memory_space<vmem>>, vector<1x384xf32>
    %51 = arith.addf %50, %47 : vector<1x384xf32>
    %c0_9 = arith.constant 0 : index
    %c0_10 = arith.constant 0 : index
    %52 = vector.load %arg4[%c0_9, %c0_10] : memref<1x384xf32, #tpu.memory_space<vmem>>, vector<1x384xf32>
    tpu.vector_store %arg4[%c0_9, %c0_10], %51 {strides = array<i32>} : memref<1x384xf32, #tpu.memory_space<vmem>>, vector<1x384xf32>,
    %c0_11 = arith.constant 0 : index
    %c0_12 = arith.constant 0 : index
    %53 = vector.load %arg5[%c0_11, %c0_12] : memref<1x384xf32, #tpu.memory_space<vmem>>, vector<1x384xf32>
    %54 = arith.addf %53, %49 : vector<1x384xf32>
    %c0_13 = arith.constant 0 : index
    %c0_14 = arith.constant 0 : index
    %55 = vector.load %arg5[%c0_13, %c0_14] : memref<1x384xf32, #tpu.memory_space<vmem>>, vector<1x384xf32>
    tpu.vector_store %arg5[%c0_13, %c0_14], %54 {strides = array<i32>} : memref<1x384xf32, #tpu.memory_space<vmem>>, vector<1x384xf32>,
    %c0_i32_15 = arith.constant 0 : i32
    %56 = arith.cmpi eq, %arg0, %c0_i32_15 : i32
    %57 = arith.extui %56 : i1 to i32
    %c0_i32_16 = arith.constant 0 : i32
    %58 = arith.cmpi ne, %57, %c0_i32_16 : i32
    scf.if %58 {
      %c0_17 = arith.constant 0 : index
      %c0_18 = arith.constant 0 : index
      %59 = vector.load %arg4[%c0_17, %c0_18] : memref<1x384xf32, #tpu.memory_space<vmem>>, vector<1x384xf32>
      %60 = vector.shape_cast %59 : vector<1x384xf32> to vector<1x1x384xf32>
      %cst_19 = arith.constant dense<0.000000e+00> : vector<1xf32>
      %61 = vector.multi_reduction <add>, %60, %cst_19 [1, 2] : vector<1x1x384xf32> to vector<1xf32>
      %62 = vector.shape_cast %61 : vector<1xf32> to vector<1x1x1xf32>
      %63 = vector.extract %62[0, 0, 0] : f32 from vector<1x1x1xf32>
      %64 = vector.broadcast %63 : f32 to vector<1x1xf32>
      %c0_20 = arith.constant 0 : index
      %c0_21 = arith.constant 0 : index
      %65 = vector.load %arg5[%c0_20, %c0_21] : memref<1x384xf32, #tpu.memory_space<vmem>>, vector<1x384xf32>
      %66 = vector.shape_cast %65 : vector<1x384xf32> to vector<1x1x384xf32>
      %cst_22 = arith.constant dense<0.000000e+00> : vector<1xf32>
      %67 = vector.multi_reduction <add>, %66, %cst_22 [1, 2] : vector<1x1x384xf32> to vector<1xf32>
      %68 = vector.shape_cast %67 : vector<1xf32> to vector<1x1x1xf32>
      %69 = vector.extract %68[0, 0, 0] : f32 from vector<1x1x1xf32>
      %70 = vector.broadcast %69 : f32 to vector<1x1xf32>
      %cst_23 = arith.constant 0.00333333341 : f32
      %71 = vector.broadcast %cst_23 : f32 to vector<1x1xf32>
      %72 = arith.mulf %64, %71 : vector<1x1xf32>
      %cst_24 = arith.constant 0.0333333351 : f32
      %73 = vector.broadcast %cst_24 : f32 to vector<1x1xf32>
      %74 = arith.mulf %70, %73 : vector<1x1xf32>
      %75 = arith.addf %72, %74 : vector<1x1xf32>
      %c0_25 = arith.constant 0 : index
      %c0_26 = arith.constant 0 : index
      %76 = vector.load %arg3[%c0_25, %c0_26] : memref<1x1xf32, #tpu.memory_space<vmem>>, vector<1x1xf32>
      tpu.vector_store %arg3[%c0_25, %c0_26], %75 {strides = array<i32>} : memref<1x1xf32, #tpu.memory_space<vmem>>, vector<1x1xf32>,
    } else {
    }
    return
  }
  func.func @transform_0(%arg0: i32) -> (i32, i32) {
    %c0_i32 = arith.constant 0 : i32
    %c0_i32_0 = arith.constant 0 : i32
    return %c0_i32, %arg0 : i32, i32
  }
  func.func @transform_1(%arg0: i32) -> (i32, i32) {
    %c0_i32 = arith.constant 0 : i32
    %c0_i32_0 = arith.constant 0 : i32
    return %c0_i32, %arg0 : i32, i32
  }
  func.func @transform_2(%arg0: i32) -> (i32, i32) {
    %c0_i32 = arith.constant 0 : i32
    %c0_i32_0 = arith.constant 0 : i32
    %c0_i32_1 = arith.constant 0 : i32
    return %c0_i32, %c0_i32_0 : i32, i32
  }
}

</mosaic_0001>

<bundles_post_ra>
// kernel: tpu_custom_call.1
= control target key start
LH: loop header
LB: loop body
LE: loop exit
PB: predicated region body
PF: predicated region fallthrough
CT: control target
= control target key end

     0   :  { %7 = vsyncpa [#allocation5], 0  ;;  %s610_s0 = inlined_call_operand.hbm [shape: f32[7,300], index: 0, kind: input, shape index: {}]   ;;  %s611_s1 = inlined_call_operand.hbm [shape: f32[7,300], index: 1, kind: input, shape index: {}]   ;;  %s612_s2 = inlined_call_operand.hbm [shape: f32[1,1], index: 2, kind: output, shape index: {}]  }
   0x1   :  { %8 = vsyncpa [#allocation8], 0 }
   0x2   :  { %9 = vsyncpa [#allocation6], 0  ;;  %s15_s11 = sshll.u32 %s610_s0, 4  ;;  %s462_s12 = smov [#allocation4]   ;;  %s16_s11 = int_to_ptr.hbm [resolvable:$true] %s15_s11 }
   0x3   :  { %s17_s13 = sshll.u32 %s462_s12, 4  ;;  %s26_s16 = sshll.u32 %s611_s1, 4  ;;  %s18_s13 = int_to_ptr.vmem [resolvable:$true] %s17_s13  ;;  %s27_s16 = int_to_ptr.hbm [resolvable:$true] %s26_s16 }
   0x4   :  { %20 = dma.hbm_to_vmem [thread:$0]  %s16_s11, 384, %s18_s13, [#allocation5]  }
   0x5   :  { %s463_s17 = smov [#allocation7]  }
   0x6   :  { %s28_s18 = sshll.u32 %s463_s17, 4  ;;  %s29_s18 = int_to_ptr.vmem [resolvable:$true] %s28_s18 }
   0x7   :  { %31 = dma.hbm_to_vmem [thread:$0]  %s27_s16, 384, %s29_s18, [#allocation8]  }
   0x8   :  { %456 = dma.done.wait [#allocation5], 384  }
   0x9   :  { %457 = vsyncadd [#allocation5], 4294966912 }
   0xa   :  { %458 = dma.done.wait [#allocation8], 384  }
   0xb   :  { %459 = vsyncadd [#allocation8], 4294966912  ;;  %v44_v0 = vlaneseq  ;;  %v464_v2 = vmov 0.0   ;;  %v496_v3 = vld [vmem:[#allocation4] sm:$0x7f]  ;;  %s465_s19 = smov [#allocation9]  }
   0xc   :  { %v498_v4 = vld [vmem:[#allocation4 + $0x8] sm:$0x7f]  ;;  %v500_v5 = vld [vmem:[#allocation4 + $0x10] sm:$0x7f]  ;;  %v56_v6 = vmul.f32 %v496_v3, %v496_v3  ;;  %v53_v48 = vld [vmem:[#allocation7] sm:$0x7f] }
   0xd   :  { %vm488_vm0 = vcmp.lt.s32.totalorder %v44_v0, 384  ;;  %v57_v7 = vmul.f32 %v498_v4, %v498_v4  ;;  %v58_v8 = vmul.f32 %v500_v5, %v500_v5  ;;  %v117_v38 = vshrl.u32 %v44_v0, 7  ;;  %v54_v51 = vld [vmem:[#allocation7 + $0x8] sm:$0x7f]  ;;  %v55_v54 = vld [vmem:[#allocation7 + $0x10] sm:$0x7f] }
   0xe   :  { %48 = vst.msk [vmem:[#allocation2] sm:$0x7] %vm488_vm0, %v464_v2  ;;  %v62_v9 = vrot.slane %v56_v6, 1  ;;  %s345_s20 = sshll.u32 %s465_s19, 4  ;;  %s347_s23 = sshll.u32 %s612_s2, 4  ;;  %s346_s20 = int_to_ptr.vmem [resolvable:$true] %s345_s20  ;;  %s348_s23 = int_to_ptr.hbm [resolvable:$true] %s347_s23 }
   0xf   :  { %49 = vst.msk [vmem:[#allocation3] sm:$0x7] %vm488_vm0, %v464_v2  ;;  %v63_v10 = vrot.slane %v57_v7, 1  ;;  %v64_v11 = vrot.slane %v58_v8, 1  ;;  %vm118_vm10 = vcmp.lt.s32.totalorder %v117_v38, 3 }
  0x10   :  { %v68_v12 = vadd.f32 %v62_v9, %v56_v6 }
  0x11   :  { %v69_v13 = vadd.f32 %v63_v10, %v57_v7  ;;  %v70_v14 = vadd.f32 %v64_v11, %v58_v8 }
  0x12   :  { %v74_v15 = vrot.slane %v68_v12, 2 }
  0x13   :  { %v75_v16 = vrot.slane %v69_v13, 2  ;;  %v76_v17 = vrot.slane %v70_v14, 2 }
  0x14   :  { %v80_v18 = vadd.f32 %v74_v15, %v68_v12 }
  0x15   :  { %v81_v19 = vadd.f32 %v75_v16, %v69_v13  ;;  %v82_v20 = vadd.f32 %v76_v17, %v70_v14 }
  0x16   :  { %v83_v21 = vmax.f32 %v80_v18, 1e-24 }
  0x17   :  { %v84_v22 = vmax.f32 %v81_v19, 1e-24  ;;  %v85_v23 = vmax.f32 %v82_v20, 1e-24  ;;  %v240_v20 = vand.u32 127, %v44_v0 }
  0x18   :  { %366 = vrsqrt.f32 %v83_v21  ;;  %vm92_vm1 = vweird.f32 %v83_v21 }
  0x19   :  { %368 = vrsqrt.f32 %v84_v22  ;;  %vm102_vm3 = vweird.f32 %v84_v22  ;;  %vm112_vm5 = vweird.f32 %v85_v23 }
  0x1a   :  { %370 = vrsqrt.f32 %v85_v23 }
  0x1e   :  { %v367_v24 = vpop.eup %366 }
  0x1f   :  { %v369_v25 = vpop.eup %368  ;;  %v87_v26 = vmul.f32 %v367_v24, %v83_v21  ;;  %vm93_vm2 = vweird.f32 %v367_v24 }
  0x20   :  { %v371_v27 = vpop.eup %370  ;;  %v97_v28 = vmul.f32 %v369_v25, %v84_v22  ;;  %vm103_vm4 = vweird.f32 %v369_v25  ;;  %vm94_vm7 = vmor %vm92_vm1, %vm93_vm2 }
  0x21   :  { %v88_v29 = vmul.f32 %v367_v24, %v87_v26  ;;  %v107_v30 = vmul.f32 %v371_v27, %v85_v23  ;;  %vm113_vm6 = vweird.f32 %v371_v27  ;;  %vm104_vm8 = vmor %vm102_vm3, %vm103_vm4  ;;  %vm263_vm4 = vcmask 1040384  }
  0x22   :  { %v98_v31 = vmul.f32 %v369_v25, %v97_v28  ;;  %vm114_vm9 = vmor %vm112_vm5, %vm113_vm6 }
  0x23   :  { %v89_v32 = vmul.f32 0.5, %v88_v29  ;;  %v108_v33 = vmul.f32 %v371_v27, %v107_v30 }
  0x24   :  { %v99_v34 = vmul.f32 0.5, %v98_v31 }
  0x25   :  { %v90_v35 = vsub.f32 1.5, %v89_v32  ;;  %v109_v36 = vmul.f32 0.5, %v108_v33 }
  0x26   :  { %v100_v37 = vsub.f32 1.5, %v99_v34 }
  0x27   :  { %v91_v39 = vmul.f32 %v367_v24, %v90_v35  ;;  %v110_v40 = vsub.f32 1.5, %v109_v36 }
  0x28   :  { %v101_v41 = vmul.f32 %v369_v25, %v100_v37 }
  0x29   :  { %v95_v42 = vsel %vm94_vm7, %v367_v24, %v91_v39  ;;  %v111_v43 = vmul.f32 %v371_v27, %v110_v40 }
  0x2a   :  { %v105_v44 = vsel %vm104_vm8, %v369_v25, %v101_v41  ;;  %v119_v45 = vperm.slane %v95_v42, 3 }
  0x2b   :  { %v115_v46 = vsel %vm114_vm9, %v371_v27, %v111_v43  ;;  %v120_v47 = vperm.slane %v105_v44, 3  ;;  %v534_v27 = vadd.s32 256, %v240_v20 }
  0x2c   :  { %v121_v49 = vperm.slane %v115_v46, 3  ;;  %v122_v50 = vsel %vm118_vm10, 1.0, %v119_v45 }
  0x2d   :  { %v123_v52 = vsel %vm118_vm10, 1.0, %v120_v47  ;;  %v125_v53 = vmul.f32 %v122_v50, %v496_v3  ;;  %vm250_vm2 = vcmp.lt.s32.totalorder %v534_v27, 300 }
  0x2e   :  { %v124_v55 = vsel %vm118_vm10, 1.0, %v121_v49  ;;  %v126_v56 = vmul.f32 %v123_v52, %v498_v4  ;;  %vm265_vm10 = vcmask 1041408  }
  0x2f   :  { %v127_v57 = vmul.f32 %v124_v55, %v500_v5  ;;  %v128_v58 = vsub.f32 %v125_v53, %v53_v48 }
  0x30   :  { %v129_v59 = vsub.f32 %v126_v56, %v54_v51 }
  0x31   :  { %v130_v60 = vsub.f32 %v127_v57, %v55_v54  ;;  %v131_v61 = vmul.f32 %v128_v58, %v128_v58 }
  0x32   :  { %v132_v62 = vmul.f32 %v129_v59, %v129_v59 }
  0x33   :  { %v133_v63 = vmul.f32 %v130_v60, %v130_v60  ;;  %v137_v2 = vrot.slane %v131_v61, 1  ;;  %v146_v6 = vrot.slane %v131_v61, 2 }
  0x34   :  { %v138_v7 = vrot.slane %v132_v62, 1  ;;  %v147_v8 = vrot.slane %v132_v62, 2 }
  0x35   :  { %v139_v9 = vrot.slane %v133_v63, 1  ;;  %v143_v10 = vadd.f32 %v137_v2, %v131_v61  ;;  %v148_v11 = vrot.slane %v133_v63, 2 }
  0x36   :  { %v144_v3 = vadd.f32 %v138_v7, %v132_v62 }
  0x37   :  { %v145_v12 = vadd.f32 %v139_v9, %v133_v63  ;;  %v512_v13 = vadd.f32 %v146_v6, %v143_v10  ;;  %v158_v4 = vrot.slane %v143_v10, 2 }
  0x38   :  { %v514_v14 = vadd.f32 %v147_v8, %v144_v3  ;;  %v159_v5 = vrot.slane %v144_v3, 2 }
  0x39   :  { %v516_v15 = vadd.f32 %v148_v11, %v145_v12  ;;  %v160_v16 = vrot.slane %v145_v12, 2  ;;  %v518_v17 = vadd.f32 %v158_v4, %v143_v10  ;;  %372 = vrsqrt.f32 %v512_v13 }
  0x3a   :  { %v521_v18 = vadd.f32 %v159_v5, %v144_v3  ;;  %374 = vrsqrt.f32 %v514_v14  ;;  %vm174_vm11 = vcmp.eq.f32.partialorder %v512_v13, inf  ;;  %v177_v29 = vand.u32 2147483648, %v512_v13 }
  0x3b   :  { %v523_v19 = vadd.f32 %v160_v16, %v145_v12  ;;  %376 = vrsqrt.f32 %v516_v15  ;;  %vm186_vm12 = vcmp.eq.f32.partialorder %v514_v14, inf  ;;  %v189_v0 = vand.u32 2147483648, %v514_v14 }
  0x3c   :  { %378 = vrsqrt.f32 %v518_v17  ;;  %vm176_vm13 = vcmp.eq.f32.partialorder %v512_v13, 0.0  ;;  %vm188_vm14 = vcmp.eq.f32.partialorder %v514_v14, 0.0  ;;  %vm198_vm15 = vcmp.eq.f32.partialorder %v516_v15, inf }
  0x3d   :  { %380 = vrsqrt.f32 %v521_v18  ;;  %vm200_vm1 = vcmp.eq.f32.partialorder %v516_v15, 0.0  ;;  %v201_v37 = vand.u32 2147483648, %v516_v15  ;;  %vm210_vm3 = vcmp.eq.f32.partialorder %v518_v17, inf }
  0x3e   :  { %382 = vrsqrt.f32 %v523_v19  ;;  %v213_v44 = vand.u32 2147483648, %v518_v17  ;;  %vm222_vm5 = vcmp.eq.f32.partialorder %v521_v18, inf  ;;  %v225_v52 = vand.u32 2147483648, %v521_v18 }
  0x3f   :  { %v373_v21 = vpop.eup %372  ;;  %vm234_vm6 = vcmp.eq.f32.partialorder %v523_v19, inf  ;;  %vm236_vm7 = vcmp.eq.f32.partialorder %v523_v19, 0.0  ;;  %v237_v6 = vand.u32 2147483648, %v523_v19  ;;  %vm212_vm8 = vcmp.eq.f32.partialorder %v518_v17, 0.0 }
  0x40   :  { %v168_v22 = vmul.f32 %v373_v21, %v512_v13  ;;  %v375_v23 = vpop.eup %374  ;;  %vm224_vm9 = vcmp.eq.f32.partialorder %v521_v18, 0.0 }
  0x41   :  { %v377_v24 = vpop.eup %376  ;;  %v180_v26 = vmul.f32 %v375_v23, %v514_v14 }
  0x42   :  { %v169_v25 = vmul.f32 %v373_v21, %v168_v22  ;;  %v379_v28 = vpop.eup %378  ;;  %v192_v30 = vmul.f32 %v377_v24, %v516_v15  ;;  %v257_v22 = vld [vmem:[#allocation2] sm:$0x7] }
  0x43   :  { %v381_v31 = vpop.eup %380  ;;  %v181_v33 = vmul.f32 %v375_v23, %v180_v26  ;;  %v204_v34 = vmul.f32 %v379_v28, %v518_v17 }
  0x44   :  { %v170_v32 = vmul.f32 0.5, %v169_v25  ;;  %v383_v35 = vpop.eup %382  ;;  %v193_v36 = vmul.f32 %v377_v24, %v192_v30  ;;  %v216_v38 = vmul.f32 %v381_v31, %v521_v18 }
  0x45   :  { %v182_v40 = vmul.f32 0.5, %v181_v33  ;;  %v205_v41 = vmul.f32 %v379_v28, %v204_v34  ;;  %v228_v42 = vmul.f32 %v383_v35, %v523_v19 }
  0x46   :  { %v171_v39 = vsub.f32 1.5, %v170_v32  ;;  %v194_v43 = vmul.f32 0.5, %v193_v36  ;;  %v217_v45 = vmul.f32 %v381_v31, %v216_v38 }
  0x47   :  { %v183_v47 = vsub.f32 1.5, %v182_v40  ;;  %v206_v48 = vmul.f32 0.5, %v205_v41  ;;  %v229_v49 = vmul.f32 %v383_v35, %v228_v42 }
  0x48   :  { %v172_v46 = vmul.f32 %v373_v21, %v171_v39  ;;  %v195_v50 = vsub.f32 1.5, %v194_v43  ;;  %v218_v51 = vmul.f32 0.5, %v217_v45 }
  0x49   :  { %v184_v54 = vmul.f32 %v375_v23, %v183_v47  ;;  %v207_v55 = vsub.f32 1.5, %v206_v48  ;;  %v230_v56 = vmul.f32 0.5, %v229_v49 }
  0x4a   :  { %v173_v53 = vmul.f32 %v172_v46, %v512_v13  ;;  %v196_v57 = vmul.f32 %v377_v24, %v195_v50  ;;  %v219_v58 = vsub.f32 1.5, %v218_v51 }
  0x4b   :  { %v185_v60 = vmul.f32 %v184_v54, %v514_v14  ;;  %v208_v61 = vmul.f32 %v379_v28, %v207_v55  ;;  %v231_v62 = vsub.f32 1.5, %v230_v56 }
  0x4c   :  { %v175_v59 = vsel %vm174_vm11, %v512_v13, %v173_v53  ;;  %v197_v63 = vmul.f32 %v196_v57, %v516_v15  ;;  %v220_v2 = vmul.f32 %v381_v31, %v219_v58 }
  0x4d   :  { %v187_v7 = vsel %vm186_vm12, %v514_v14, %v185_v60  ;;  %v209_v8 = vmul.f32 %v208_v61, %v518_v17  ;;  %v232_v9 = vmul.f32 %v383_v35, %v231_v62  ;;  %v178_v10 = vsel %vm176_vm13, %v177_v29, %v175_v59 }
  0x4e   :  { %v190_v11 = vsel %vm188_vm14, %v189_v0, %v187_v7  ;;  %v199_v3 = vsel %vm198_vm15, %v516_v15, %v197_v63  ;;  %v221_v12 = vmul.f32 %v220_v2, %v521_v18  ;;  %v274_v0 = vld [vmem:[#allocation3] sm:$0x7] }
  0x4f   :  { %v202_v4 = vsel %vm200_vm1, %v201_v37, %v199_v3  ;;  %v233_v5 = vmul.f32 %v232_v9, %v523_v19  ;;  %v261_v16 = vrot.slane %v190_v11, 7  ;;  %v211_v13 = vsel %vm210_vm3, %v518_v17, %v209_v8 }
  0x50   :  { %v253_v14 = vsel %vm250_vm2, %v202_v4, 0.0  ;;  %v214_v20 = vsel %vm212_vm8, %v213_v44, %v211_v13  ;;  %v223_v21 = vsel %vm222_vm5, %v521_v18, %v221_v12 }
  0x51   :  { %v235_v15 = vsel %vm234_vm6, %v523_v19, %v233_v5  ;;  %v262_v23 = vrot.slane %v253_v14, 6  ;;  %v264_v24 = vsel %vm263_vm4, %v178_v10, %v261_v16  ;;  %v226_v17 = vsel %vm224_vm9, %v225_v52, %v223_v21  ;;  %278 = vst [vmem:[#allocation1] sm:$0xff] %v214_v20 }
  0x52   :  { %v238_v25 = vsel %vm236_vm7, %v237_v6, %v235_v15  ;;  %279 = vst [vmem:[#allocation1 + $0x9] sm:$0xff] %v226_v17 }
  0x53   :  { %v256_v26 = vsel %vm250_vm2, %v238_v25, 0.0  ;;  %v266_v28 = vsel %vm265_vm10, %v264_v24, %v262_v23 }
  0x54   :  { %v268_v29 = vadd.f32 %v266_v28, %v257_v22  ;;  %280 = vst [vmem:[#allocation1 + $0x12] sm:$0xff] %v256_v26 }
  0x56   :  { %273 = vst.msk [vmem:[#allocation2] sm:$0x7] %vm488_vm0, %v268_v29 }
  0x5b   :  { %v282_v30 = vld [vmem:[#allocation1 + $0x3] ss:$9 sm:$0xff] }
  0x5c   :  { %v284_v31 = vadd.f32 %v282_v30, %v274_v0 }
  0x5d   :  { %v289_v32 = vld [vmem:[#allocation2] sm:$0x7] }
  0x5e   :  { %v291_v18 = vperm.slane %v289_v32, 0  ;;  %v292_v33 = vperm.slane %v289_v32, 1  ;;  %v293_v34 = vperm.slane %v289_v32, 2  ;;  %285 = vst.msk [vmem:[#allocation3] sm:$0x7] %vm488_vm0, %v284_v31  ;;  %vm338_vm0 = vcmask 0  }
  0x60   :  { %v297_v19 = vsel %vm263_vm4, %v291_v18, 0.0  ;;  %v298_v27 = vsel %vm263_vm4, %v292_v33, 0.0  ;;  %v300_v35 = vsel %vm263_vm4, %v293_v34, 0.0 }
  0x61   :  { %v299_v36 = vadd.f32 %v298_v27, %v297_v19 }
  0x63   :  { %v301_v37 = vadd.f32 %v300_v35, %v299_v36 }
  0x65   :  { %302 = vadd.xlane.f32.xlu0 %v301_v37  ;;  %v312_v38 = vld [vmem:[#allocation3] sm:$0x7] }
  0x66   :  { %v314_v39 = vperm.slane %v312_v38, 0  ;;  %v315_v40 = vperm.slane %v312_v38, 1  ;;  %v316_v41 = vperm.slane %v312_v38, 2 }
  0x68   :  { %v320_v42 = vsel %vm263_vm4, %v314_v39, 0.0  ;;  %v321_v43 = vsel %vm263_vm4, %v315_v40, 0.0  ;;  %v323_v1 = vsel %vm263_vm4, %v316_v41, 0.0 }
  0x69   :  { %v322_v44 = vadd.f32 %v321_v43, %v320_v42 }
  0x6b   :  { %v324_v45 = vadd.f32 %v323_v1, %v322_v44 }
  0x6d   :  { %325 = vadd.xlane.f32.xlu0 %v324_v45 }
  0xd8   :  { %v303_v46 = vpop.xlane.xlu0 %302 }
  0xd9   :  { %v304_v47 = vrot.slane %v303_v46, 4 }
  0xdb   :  { %v305_v48 = vadd.f32 %v304_v47, %v303_v46 }
  0xdd   :  { %v306_v49 = vrot.slane %v305_v48, 2 }
  0xdf   :  { %v307_v50 = vadd.f32 %v306_v49, %v305_v48 }
  0xe0   :  { %v326_v51 = vpop.xlane.xlu0 %325 }
  0xe1   :  { %v327_v52 = vrot.slane %v326_v51, 4  ;;  %v308_v53 = vrot.slane %v307_v50, 1 }
  0xe3   :  { %v328_v54 = vadd.f32 %v327_v52, %v326_v51  ;;  %v309_v55 = vadd.f32 %v308_v53, %v307_v50 }
  0xe5   :  { %v329_v56 = vrot.slane %v328_v54, 2  ;;  %358 = vpush %v309_v55 }
  0xe7   :  { %v330_v57 = vadd.f32 %v329_v56, %v328_v54 }
  0xe9   :  { %v331_v58 = vrot.slane %v330_v57, 1 }
  0xeb   :  { %v332_v59 = vadd.f32 %v331_v58, %v330_v57 }
  0xed   :  { %360 = vpush %v332_v59 }
 0x116   :  { %s359_s0 = spop %358 }
 0x117   :  { %v311_v60 = vstv %s359_s0 }
 0x118   :  { %v335_v62 = vmul.f32 0.0033333334, %v311_v60 }
 0x11e   :  { %s361_s1 = spop %360 }
 0x11f   :  { %v334_v61 = vstv %s361_s1 }
 0x120   :  { %v336_v63 = vmul.f32 0.033333335, %v334_v61 }
 0x122   :  { %v337_v2 = vadd.f32 %v336_v63, %v335_v62 }
 0x124   :  { %339 = vst.msk [vmem:[#allocation9] sm:$0x1] %vm338_vm0, %v337_v2 }
 0x125   :  { %350 = dma.vmem_to_hbm [thread:$0]  %s346_s20, 16, %s348_s23, [#allocation6]  }
 0x126   :  { %460 = dma.done.wait [#allocation6], 16  }
 0x127   :  { %461 = vsyncadd [#allocation6], 4294967280 }
 0x128   :  { %355 = vsyncpa [#allocation5], 1 }
 0x129   :  { %356 = vsyncpa [#allocation8], 1 }
 0x12a   :  { %357 = vsyncpa [#allocation6], 1 }

</bundles_post_ra>
